<compile_context>
chip_gen: v6e
topology: v6e:2x2x1
jax: 0.10.0
libtpu: 0.0.40
codegen_flags: <defaults>
</compile_context>

<pallas_src>
import jax
import jax.numpy as jnp
from jax.experimental import pallas as pl
from jax.experimental.pallas import tpu as pltpu


def _round_up(n, m):
    return (n + m - 1) // m * m


def dueling_kernel(xt_ref, w1_ref, b1_ref, wout_ref, bout_ref, out_ref):
    """One batch tile, computed transposed (batch on the lane axis).

    xt_ref   : [F, TB]   input tile, transposed (features on sublanes)
    w1_ref   : [H, F]    hidden weight (PyTorch [out, in] layout)
    b1_ref   : [H, 1]    hidden bias (column vector -> lane broadcast)
    wout_ref : [O, H]    folded head weight  (Wa - mean_rows(Wa) + Wv)
    bout_ref : [O, 1]    folded head bias    (ba - mean(ba) + bv)
    out_ref  : [O, TB]   Q-values, transposed (lane-dense in batch)
    """
    # h^T = relu(W1 @ x^T + b1)  -> [H, TB]; contraction dim on sublanes, no transpose.
    ht = jnp.dot(w1_ref[...], xt_ref[...], preferred_element_type=jnp.float32)
    ht = jnp.maximum(ht + b1_ref[...], 0.0)
    # out^T = W_out @ h^T + b_out  -> [O, TB]; dueling combine already folded in.
    out_ref[...] = (
        jnp.dot(wout_ref[...], ht, preferred_element_type=jnp.float32) + bout_ref[...]
    ).astype(out_ref.dtype)


def dueling_net_forward(x, kparams, *, block_b=4096, x_is_transposed=False,
                        return_transposed=False):
    """Forward of Net: x [B, n_feature] f32 -> Q-values [B, n_output] f32.

    kparams are the fused kernel params from fuse_params().
    Set x_is_transposed=True to pass x^T [F, B] and skip the wrapper transpose;
    set return_transposed=True to receive [O, B] and skip the output transpose.
    """
    w1, b1 = kparams["w1"], kparams["b1"]          # [H, F], [H, 1]
    wout, bout = kparams["wout"], kparams["bout"]  # [O, H], [O, 1]
    n_hidden = w1.shape[0]
    n_output = wout.shape[0]

    if x_is_transposed:
        F, B = x.shape
        xt = x
    else:
        B, F = x.shape
        xt = x.T  # one extra pass over x; feed x^T from the producer to skip it.

    # Lane-dense tiles even for small DQN batches (avoid masked vst.msk stores).
    bp = _round_up(B, 128)
    tb = min(block_b, bp)
    # v7x megacore: prefer >= 2 grid steps when the batch allows it.
    if bp // tb < 2 and bp >= 256:
        tb = _round_up(bp // 2, 128)
    bp = _round_up(bp, tb)               # grid divides exactly
    if bp != B:
        xt = jnp.pad(xt, ((0, 0), (0, bp - B)))
    grid = (bp // tb,)

    def const_spec(a):
        nd = a.ndim
        return pl.BlockSpec(a.shape, lambda i, _nd=nd: (0,) * _nd)

    weight_bytes = sum(int(a.size) * a.dtype.itemsize for a in (w1, b1, wout, bout))
    cost = pl.CostEstimate(
        flops=2 * bp * (F * n_hidden + n_hidden * n_output),
        transcendentals=0,
        bytes_accessed=bp * (F + n_output) * 4 + weight_bytes,
    )

    out_t = pl.pallas_call(
        dueling_kernel,
        out_shape=jax.ShapeDtypeStruct((n_output, bp), jnp.float32),
        grid=grid,
        in_specs=[
            pl.BlockSpec((F, tb), lambda i: (0, i)),   # x^T: batch-tiled on lanes
            const_spec(w1),                            # weights resident across grid
            const_spec(b1),
            const_spec(wout),
            const_spec(bout),
        ],
        out_specs=pl.BlockSpec((n_output, tb), lambda i: (0, i)),  # lane-dense output
        compiler_params=pltpu.CompilerParams(
            dimension_semantics=("parallel",),  # both v7x TCs; no-op on v5e/v6e
        ),
        cost_estimate=cost,
    )(xt, w1, b1, wout, bout)

    if bp != B:
        out_t = out_t[:, :B]
    if return_transposed:
        return out_t                      # [O, B]: cheap argmax over 8 sublanes
    return out_t.T                        # [B, O]: matches PyTorch Net.forward


def init_params(key, n_feature, n_hidden, n_output):
    """nn.Linear-style init; raw weights in PyTorch [out, in] layout (un-fused)."""
    k1, k2, k3, k4, k5, k6 = jax.random.split(key, 6)
    s1 = 1.0 / jnp.sqrt(n_feature)
    s2 = 1.0 / jnp.sqrt(n_hidden)
    return {
        "w1": jax.random.uniform(k1, (n_hidden, n_feature), jnp.float32, -s1, s1),
        "b1": jax.random.uniform(k2, (n_hidden,), jnp.float32, -s1, s1),
        "wv": jax.random.uniform(k3, (1, n_hidden), jnp.float32, -s2, s2),
        "bv": jax.random.uniform(k4, (1,), jnp.float32, -s2, s2),
        "wa": jax.random.uniform(k5, (n_output, n_hidden), jnp.float32, -s2, s2),
        "ba": jax.random.uniform(k6, (n_output,), jnp.float32, -s2, s2),
    }


def fuse_params(p):
    """Fold value head + advantage-mean subtraction into one output layer (ONCE):
        out = v + (a - mean(a)),  a = Wa h + ba,  v = Wv h + bv
            = (Wa - mean_rows(Wa) + Wv) h + (ba - mean(ba) + bv) = W_out h + b_out
    """
    wout = p["wa"] - p["wa"].mean(axis=0, keepdims=True) + p["wv"]
    bout = p["ba"] - p["ba"].mean() + p["bv"]
    return {
        "w1": p["w1"],
        "b1": p["b1"].reshape(-1, 1),     # column vectors -> lane broadcast in-kernel
        "wout": wout,
        "bout": bout.reshape(-1, 1),
    }


def reference_forward(x, p):
    """Pure-JAX reference matching the PyTorch Net.forward exactly (raw params)."""
    h = jnp.maximum(x @ p["w1"].T + p["b1"], 0.0)
    v = h @ p["wv"].T + p["bv"]
    a = h @ p["wa"].T + p["ba"]
    return v + (a - a.mean(axis=1, keepdims=True))


if __name__ == "__main__":
    n_feature, n_hidden, n_output = 16, 32, 8

    key = jax.random.PRNGKey(0)
    kx, kp, kx2 = jax.random.split(key, 3)
    raw_params = init_params(kp, n_feature, n_hidden, n_output)
    kparams = fuse_params(raw_params)

    # Typical small DQN batch: exercises the pad-to-128-lanes path.
    x = jax.random.normal(kx, (4, n_feature), jnp.float32)
    out = jax.block_until_ready(dueling_net_forward(x, kparams))
    ref = reference_forward(x, raw_params)
    assert out.shape == (4, n_output)
    assert jnp.allclose(out, ref, atol=1e-5, rtol=1e-5), "mismatch vs reference (B=4)"

    # Larger batch: exercises the multi-tile grid and padded-row slice-off.
    x2 = jax.random.normal(kx2, (260, n_feature), jnp.float32)
    out2 = jax.block_until_ready(dueling_net_forward(x2, kparams))
    ref2 = reference_forward(x2, raw_params)
    assert out2.shape == (260, n_output)
    assert jnp.allclose(out2, ref2, atol=1e-5, rtol=1e-5), "mismatch vs reference (B=260)"

    print("KERNEL_OK")
</pallas_src>

<mosaic_0001>
module attributes {stable_mosaic.version = 11 : i64} {
  func.func @dueling_kernel(%arg0: i32, %arg1: memref<16x128xf32, #tpu.memory_space<vmem>>, %arg2: memref<32x16xf32, #tpu.memory_space<vmem>>, %arg3: memref<32x1xf32, #tpu.memory_space<vmem>>, %arg4: memref<8x32xf32, #tpu.memory_space<vmem>>, %arg5: memref<8x1xf32, #tpu.memory_space<vmem>>, %arg6: memref<8x128xf32, #tpu.memory_space<vmem>>) attributes {dimension_semantics = [#tpu.dimension_semantics<parallel>], iteration_bounds = array<i64: 1>, scalar_prefetch = 0 : i64, scratch_operands = 0 : i64, tpu.core_type = #tpu.core_type<tc>, window_params = [{transform_indices = @transform_0, window_bounds = array<i64: 16, 128>}, {pipeline_mode = #tpu.pipeline_mode<synchronous>, transform_indices = @transform_1, window_bounds = array<i64: 32, 16>}, {pipeline_mode = #tpu.pipeline_mode<synchronous>, transform_indices = @transform_2, window_bounds = array<i64: 32, 1>}, {pipeline_mode = #tpu.pipeline_mode<synchronous>, transform_indices = @transform_3, window_bounds = array<i64: 8, 32>}, {pipeline_mode = #tpu.pipeline_mode<synchronous>, transform_indices = @transform_4, window_bounds = array<i64: 8, 1>}, {transform_indices = @transform_5, window_bounds = array<i64: 8, 128>}]} {
    %c0 = arith.constant 0 : index
    %c0_0 = arith.constant 0 : index
    %0 = vector.load %arg2[%c0, %c0_0] : memref<32x16xf32, #tpu.memory_space<vmem>>, vector<32x16xf32>
    %c0_1 = arith.constant 0 : index
    %c0_2 = arith.constant 0 : index
    %1 = vector.load %arg1[%c0_1, %c0_2] : memref<16x128xf32, #tpu.memory_space<vmem>>, vector<16x128xf32>
    %cst = arith.constant dense<0.000000e+00> : vector<32x128xf32>
    %2 = tpu.matmul %0, %1, %cst {dimension_numbers = #tpu.dot_dimension_numbers<[1], [0], [0], [1], [0, 0, 1, 1], [], []>} : vector<32x16xf32>, vector<16x128xf32>, vector<32x128xf32> -> vector<32x128xf32>
    %c0_3 = arith.constant 0 : index
    %c0_4 = arith.constant 0 : index
    %3 = vector.load %arg3[%c0_3, %c0_4] : memref<32x1xf32, #tpu.memory_space<vmem>>, vector<32x1xf32>
    %4 = vector.broadcast %3 : vector<32x1xf32> to vector<32x128xf32>
    %5 = arith.addf %2, %4 : vector<32x128xf32>
    %cst_5 = arith.constant 0.000000e+00 : f32
    %6 = vector.broadcast %cst_5 : f32 to vector<32x128xf32>
    %7 = arith.maximumf %5, %6 : vector<32x128xf32>
    %c0_6 = arith.constant 0 : index
    %c0_7 = arith.constant 0 : index
    %8 = vector.load %arg4[%c0_6, %c0_7] : memref<8x32xf32, #tpu.memory_space<vmem>>, vector<8x32xf32>
    %cst_8 = arith.constant dense<0.000000e+00> : vector<8x128xf32>
    %9 = tpu.matmul %8, %7, %cst_8 {dimension_numbers = #tpu.dot_dimension_numbers<[1], [0], [0], [1], [0, 0, 1, 1], [], []>} : vector<8x32xf32>, vector<32x128xf32>, vector<8x128xf32> -> vector<8x128xf32>
    %c0_9 = arith.constant 0 : index
    %c0_10 = arith.constant 0 : index
    %10 = vector.load %arg5[%c0_9, %c0_10] : memref<8x1xf32, #tpu.memory_space<vmem>>, vector<8x1xf32>
    %11 = vector.broadcast %10 : vector<8x1xf32> to vector<8x128xf32>
    %12 = arith.addf %9, %11 : vector<8x128xf32>
    %c0_11 = arith.constant 0 : index
    %c0_12 = arith.constant 0 : index
    %13 = vector.load %arg6[%c0_11, %c0_12] : memref<8x128xf32, #tpu.memory_space<vmem>>, vector<8x128xf32>
    tpu.vector_store %arg6[%c0_11, %c0_12], %12 {strides = array<i32>} : memref<8x128xf32, #tpu.memory_space<vmem>>, vector<8x128xf32>,
    return
  }
  func.func @transform_0(%arg0: i32) -> (i32, i32) {
    %c0_i32 = arith.constant 0 : i32
    %c0_i32_0 = arith.constant 0 : i32
    return %c0_i32, %arg0 : i32, i32
  }
  func.func @transform_1(%arg0: i32) -> (i32, i32) {
    %c0_i32 = arith.constant 0 : i32
    %c0_i32_0 = arith.constant 0 : i32
    %c0_i32_1 = arith.constant 0 : i32
    return %c0_i32, %c0_i32_0 : i32, i32
  }
  func.func @transform_2(%arg0: i32) -> (i32, i32) {
    %c0_i32 = arith.constant 0 : i32
    %c0_i32_0 = arith.constant 0 : i32
    %c0_i32_1 = arith.constant 0 : i32
    return %c0_i32, %c0_i32_0 : i32, i32
  }
  func.func @transform_3(%arg0: i32) -> (i32, i32) {
    %c0_i32 = arith.constant 0 : i32
    %c0_i32_0 = arith.constant 0 : i32
    %c0_i32_1 = arith.constant 0 : i32
    return %c0_i32, %c0_i32_0 : i32, i32
  }
  func.func @transform_4(%arg0: i32) -> (i32, i32) {
    %c0_i32 = arith.constant 0 : i32
    %c0_i32_0 = arith.constant 0 : i32
    %c0_i32_1 = arith.constant 0 : i32
    return %c0_i32, %c0_i32_0 : i32, i32
  }
  func.func @transform_5(%arg0: i32) -> (i32, i32) {
    %c0_i32 = arith.constant 0 : i32
    %c0_i32_0 = arith.constant 0 : i32
    return %c0_i32, %arg0 : i32, i32
  }
}

</mosaic_0001>

<bundles_post_ra>
// kernel: tpu_custom_call.1
= control target key start
LH: loop header
LB: loop body
LE: loop exit
PB: predicated region body
PF: predicated region fallthrough
CT: control target
= control target key end

     0   :  { %vm51_vm0 = vcmask 130048   ;;  %v314_v4 = vmov 0   ;;  %s391_s0 = inlined_call_operand.vmem [shape: f32[16,128], index: 0, kind: input, shape index: {}]   ;;  %s392_s1 = inlined_call_operand.vmem [shape: f32[32,16], index: 1, kind: input, shape index: {}]   ;;  %s393_s2 = inlined_call_operand.vmem [shape: f32[32,1], index: 2, kind: input, shape index: {}]   ;;  %s394_s3 = inlined_call_operand.vmem [shape: f32[8,32], index: 3, kind: input, shape index: {}]   ;;  %s395_s4 = inlined_call_operand.vmem [shape: f32[8,1], index: 4, kind: input, shape index: {}]   ;;  %s396_s5 = inlined_call_operand.hbm [shape: f32[8,128], index: 5, kind: output, shape index: {}]  }
   0x1   :  { %v26_v0 = vld [vmem:[%s391_s0 + $0x8] sm:$0xff]  ;;  %v25_v1 = vld [vmem:[%s391_s0] sm:$0xff]  ;;  %290 = vset.pattern.permute.xlu0 %v314_v4  ;;  %v30_v5 = vld [vmem:[%s393_s2 + $0x18] sm:$0xff] }
   0x2   :  { %v21_v2 = vld [vmem:[%s392_s1] sm:$0xff]  ;;  %265 = vmatprep.subr.mxu0 %v26_v0  ;;  %v22_v3 = vld [vmem:[%s392_s1 + $0x8] sm:$0xff]  ;;  %v23_v7 = vld [vmem:[%s392_s1 + $0x10] sm:$0xff]  ;;  %48 = vperm.xlu0 %290, %v30_v5  }
   0x3   :  { %269 = vmatprep.mubr.msk.f32.mxu0 %vm51_vm0, %v21_v2  ;;  %266 = vmatpush3.msra.mxu0 %v26_v0  ;;  %v28_v6 = vld [vmem:[%s393_s2 + $0x8] sm:$0xff] }
   0x4   :  { %267 = vmatprep.subr.mxu0 %v25_v1 }
   0x5   :  { %10 = vsyncpa [#allocation3], 0  ;;  %268 = vmatpush3.msra.mxu0 %v25_v1  ;;  %291 = vset.pattern.permute.xlu1 %v314_v4  ;;  %v29_v8 = vld [vmem:[%s393_s2 + $0x10] sm:$0xff]  ;;  %v24_v9 = vld [vmem:[%s392_s1 + $0x18] sm:$0xff]  ;;  %v315_v12 = vmov 0.0   ;;  %vm316_vm1 = vmmov 0  }
   0x6   :  { %270 = vmatmul.mubr.msk.f32.vlgmr.msra.gmra.mxu0 %vm51_vm0, %v22_v3  ;;  %38 = vperm.xlu1 %291, %v28_v6   ;;  %v27_v10 = vld [vmem:[%s393_s2] sm:$0xff]  ;;  %vm160_vm2 = vcmask 261120  }
   0x7   :  { %272 = vmatprep.mubr.msk.f32.mxu0 %vm51_vm0, %v23_v7  ;;  %43 = vperm.xlu0 %290, %v29_v8   ;;  %v154_v11 = vld [vmem:[%s395_s4] sm:$0xff]  ;;  %s317_s4 = smov [#allocation2]  }
   0x8   :  { %275 = vmatprep.subr.mxu1 %v315_v12  ;;  %283 = vmatprep.mubr.msk.f32.mxu1 %vm316_vm1, %v315_v12  ;;  %v153_v29 = vld [vmem:[%s394_s3] sm:$0xff]  ;;  %s241_s14 = sshll.u32 %s317_s4, 4  ;;  %s242_s14 = int_to_ptr.vmem [resolvable:$true] %s241_s14 }
   0x9   :  { %s292_s15 = scalar_lea.vmem %s242_s14, 128  ;;  %p297_p1 = scmp.lt.s32.totalorder %s242_s14, %s242_s14 }
   0xa   :  { %273 = vmatmul.mubr.msk.f32.gmra.mxu0 %vm51_vm0, %v24_v9  ;;  %33 = vperm.xlu1 %291, %v27_v10   ;;  %p293_p0 = scmp.ne.s32.totalorder %s242_s14, %s292_s15  ;;  %p298_p2 = scmp.lt.s32.totalorder %s292_s15, %s292_s15 }
   0xb   :  { %157 = vperm.xlu0 %290, %v154_v11  }
   0xc   :  { %p299_p3 = por %p298_p2, %p297_p1 }
   0xe   :  { %p300_p4 = pnand %p299_p3, %p293_p0 }
  0x7d   :  { %v49_v13 = vpop.permute.xlu0 %48 }
  0x81   :  { %v39_v14 = vpop.permute.xlu1 %38 }
  0x82   :  { %v44_v18 = vpop.permute.xlu0 %43 }
  0x85   :  { %v34_v20 = vpop.permute.xlu1 %33 }
  0x86   :  { %v158_v30 = vpop.permute.xlu0 %157 }
  0xc6   :  { %v271_v15 = vpop.f32.mrf.mxu0 }
  0xc7   :  { %v136_v22 = vadd.f32 %v271_v15, %v39_v14 }
  0xc8   :  { %v130_v16 = vpop.f32.mrf.mxu0 }
  0xc9   :  { %v131_v25 = vadd.f32 %v130_v16, %v34_v20  ;;  %v150_v27 = vmax.f32 %v136_v22, 0.0 }
  0xca   :  { %v274_v17 = vpop.f32.mrf.mxu0 }
  0xcb   :  { %v146_v19 = vadd.f32 %v274_v17, %v49_v13  ;;  %v149_v28 = vmax.f32 %v131_v25, 0.0 }
  0xcc   :  { %v140_v21 = vpop.f32.mrf.mxu0 }
  0xcd   :  { %v152_v23 = vmax.f32 %v146_v19, 0.0  ;;  %v141_v24 = vadd.f32 %v140_v21, %v44_v18 }
  0xcf   :  { %v151_v26 = vmax.f32 %v141_v24, 0.0  ;;  %276 = vmatpush3.msra.mxu1 %v152_v23 }
  0xd0   :  { %277 = vmatprep.subr.mxu1 %v315_v12 }
  0xd1   :  { %278 = vmatpush3.msra.mxu1 %v151_v26 }
  0xd2   :  { %279 = vmatprep.subr.mxu1 %v315_v12 }
  0xd3   :  { %280 = vmatpush3.msra.mxu1 %v150_v27 }
  0xd4   :  { %281 = vmatprep.subr.mxu1 %v315_v12 }
  0xd5   :  { %282 = vmatpush3.msra.mxu1 %v149_v28 }
  0xd6   :  { %284 = vmatmul.mubr.msk.f32.vlgmr.msra.gmra.mxu1 %vm160_vm2, %v153_v29 }
 0x196   :  { %v230_v31 = vpop.f32.mrf.mxu1 }
 0x197   :  { %v231_v32 = vadd.f32 %v230_v31, %v158_v30 }
 0x198   :  { %v285_v33 = vpop.f32.mrf.mxu1 }
 0x199   :  { %234 = vst [vmem:[#allocation2] sm:$0xff] %v231_v32 }
 0x19a   :  { %303 = shalt.err (!%p300_p4)
}
 0x19b   :  { %244 = dma.vmem_to_hbm [thread:$0]  %s242_s14, 128, %s396_s5, [#allocation3]  }
 0x19c   :  { %312 = dma.done.wait [#allocation3], 128  }
 0x19d   :  { %313 = vsyncadd [#allocation3], 4294967168 }
 0x19e   :  { %248 = vsyncpa [#allocation3], 1 }

</bundles_post_ra>
